<compile_context>
chip_gen: v7x
topology: tpu7x:2x2x1
jax: 0.10.0
libtpu: 0.0.40
codegen_flags: <defaults>
</compile_context>

<pallas_src>
import math
import functools

import jax
import jax.numpy as jnp
from jax.experimental import pallas as pl
from jax.experimental.pallas import tpu as pltpu


def _gaussian_taps_1d(kernel_size, sigma, dim=2):
    """Per-dim normalized 1D gaussian taps, PyTorch GaussianSmoothing convention
    (exp(-((x-mean)/(2*std))**2)).  Returned as tuples of Python floats so they
    are baked into the kernel as compile-time constants.  The outer product of
    the per-dim normalized taps equals the module's normalized 2D kernel exactly."""
    if isinstance(kernel_size, (int, float)):
        kernel_size = [int(kernel_size)] * dim
    if isinstance(sigma, (int, float)):
        sigma = [float(sigma)] * dim
    taps = []
    for size, std in zip(kernel_size, sigma):
        mean = (size - 1) / 2.0
        g = [
            1.0 / (std * math.sqrt(2.0 * math.pi))
            * math.exp(-(((i - mean) / (2.0 * std)) ** 2))
            for i in range(size)
        ]
        s = sum(g)
        taps.append(tuple(v / s for v in g))
    return taps


def _make_gaussian_weight(channels, kernel_size, sigma, dim=2):
    """Full 2D weight (C, K0, K1), used only by the lax reference check."""
    if isinstance(kernel_size, (int, float)):
        kernel_size = [int(kernel_size)] * dim
    if isinstance(sigma, (int, float)):
        sigma = [float(sigma)] * dim
    grids = jnp.meshgrid(
        *[jnp.arange(s, dtype=jnp.float32) for s in kernel_size], indexing="ij"
    )
    kernel = jnp.ones((), dtype=jnp.float32)
    for size, std, mgrid in zip(kernel_size, sigma, grids):
        mean = (size - 1) / 2.0
        kernel = kernel * (
            1.0 / (std * math.sqrt(2 * math.pi))
            * jnp.exp(-(((mgrid - mean) / (2.0 * std)) ** 2))
        )
    kernel = kernel / jnp.sum(kernel)
    kernel = jnp.broadcast_to(kernel[None, :, :], (channels, *kernel.shape))
    return kernel.astype(jnp.float32)


def _gauss_sep_kernel(x_ref, o_ref, tmp_ref, *, w0, w1, Ho, Wo):
    """x_ref: (CB, H, W) block (H on sublanes, W on lanes).
    tmp_ref: (CB, Ho, W) f32 VMEM scratch.  o_ref: (CB, Ho, Wo)."""
    # Vertical pass (K0 taps): sublane-offset ref loads, constant-scalar FMAs.
    acc = x_ref[:, pl.ds(0, Ho), :].astype(jnp.float32) * w0[0]
    for di in range(1, len(w0)):
        acc = acc + x_ref[:, pl.ds(di, Ho), :].astype(jnp.float32) * w0[di]
    tmp_ref[...] = acc
    # Horizontal pass (K1 taps): lane-offset ref loads from the scratch.
    out = tmp_ref[:, :, pl.ds(0, Wo)] * w1[0]
    for dj in range(1, len(w1)):
        out = out + tmp_ref[:, :, pl.ds(dj, Wo)] * w1[dj]
    o_ref[...] = out.astype(o_ref.dtype)


def gaussian_smoothing(x, kernel_size, sigma, *, dim=2, vmem_block_budget=4 << 20):
    """x: (N, C, H, W). Depthwise gaussian smoothing, valid padding, stride 1.
    Returns (N, C, H-K0+1, W-K1+1), matching F.conv2d(x, weight, groups=C)."""
    assert dim == 2, "this Pallas kernel implements the dim=2 (spatial) case"
    N, C, H, W = x.shape
    w0, w1 = _gaussian_taps_1d(kernel_size, sigma, dim)
    K0, K1 = len(w0), len(w1)
    Ho, Wo = H - K0 + 1, W - K1 + 1
    NC = N * C
    x2 = x.reshape(NC, H, W)

    # Pick how many (H, W) images to fuse per grid step: largest divisor of N*C
    # whose double-buffered input/output blocks + scratch stay under a VMEM
    # budget that is safe even on v5e (16 MiB scoped) and v7x (64 MiB physical).
    bpe = x.dtype.itemsize
    per_img = 2 * H * W * bpe + 2 * Ho * Wo * bpe + Ho * W * 4
    cap = max(1, vmem_block_budget // per_img)
    CB = 1
    for d in range(1, NC + 1):
        if NC % d == 0 and d <= cap:
            CB = d
    # NOTE: for very large H, W a further H-strip tiling with a (K0-1)-row halo
    # would bound per-block VMEM; whole-image blocks are fine at these sizes.

    kernel = functools.partial(_gauss_sep_kernel, w0=w0, w1=w1, Ho=Ho, Wo=Wo)

    out2 = pl.pallas_call(
        kernel,
        out_shape=jax.ShapeDtypeStruct((NC, Ho, Wo), x.dtype),
        grid_spec=pltpu.PrefetchScalarGridSpec(
            num_scalar_prefetch=0,
            grid=(NC // CB,),
            in_specs=[pl.BlockSpec((CB, H, W), lambda i: (i, 0, 0))],
            out_specs=pl.BlockSpec((CB, Ho, Wo), lambda i: (i, 0, 0)),
            scratch_shapes=[pltpu.VMEM((CB, Ho, W), jnp.float32)],
        ),
        compiler_params=pltpu.CompilerParams(
            dimension_semantics=("parallel",),
        ),
    )(x2)
    return out2.reshape(N, C, Ho, Wo)


def _reference(x, weight):
    # Depthwise conv via lax.conv_general_dilated with feature_group_count=C.
    C = x.shape[1]
    w = weight[:, None, :, :]  # (C, 1, K, K) == OIHW with groups=C
    return jax.lax.conv_general_dilated(
        x, w,
        window_strides=(1, 1),
        padding="VALID",
        dimension_numbers=("NCHW", "OIHW", "NCHW"),
        feature_group_count=C,
    )


if __name__ == "__main__":
    N, C, H, W = 2, 4, 16, 16
    kernel_size = 5
    sigma = 1.0

    key = jax.random.PRNGKey(0)
    x = jax.random.normal(key, (N, C, H, W), dtype=jnp.float32)

    out = gaussian_smoothing(x, kernel_size, sigma)
    out = jax.block_until_ready(out)

    weight = _make_gaussian_weight(C, kernel_size, sigma, dim=2)
    ref = _reference(x, weight)
    assert out.shape == (N, C, H - kernel_size + 1, W - kernel_size + 1)
    assert jnp.allclose(out, ref, atol=1e-5, rtol=1e-5), float(
        jnp.max(jnp.abs(out - ref))
    )

    print("KERNEL_OK")
</pallas_src>

<mosaic_0001>
module attributes {stable_mosaic.version = 11 : i64} {
  func.func @_gauss_sep_kernel(%arg0: i32, %arg1: memref<8x16x16xf32, #tpu.memory_space<vmem>>, %arg2: memref<8x12x12xf32, #tpu.memory_space<vmem>>, %arg3: memref<8x12x16xf32, #tpu.memory_space<vmem>>) attributes {dimension_semantics = [#tpu.dimension_semantics<parallel>], iteration_bounds = array<i64: 1>, scalar_prefetch = 0 : i64, scratch_operands = 1 : i64, tpu.core_type = #tpu.core_type<tc>, window_params = [{transform_indices = @transform_0, window_bounds = array<i64: 8, 16, 16>}, {transform_indices = @transform_1, window_bounds = array<i64: 8, 12, 12>}]} {
    %c0 = arith.constant 0 : index
    %c0_0 = arith.constant 0 : index
    %c0_1 = arith.constant 0 : index
    %0 = vector.load %arg1[%c0, %c0_0, %c0_1] : memref<8x16x16xf32, #tpu.memory_space<vmem>>, vector<8x12x16xf32>
    %cst = arith.constant 0.111703366 : f32
    %1 = vector.broadcast %cst : f32 to vector<8x12x16xf32>
    %2 = arith.mulf %0, %1 : vector<8x12x16xf32>
    %c0_2 = arith.constant 0 : index
    %c1 = arith.constant 1 : index
    %c0_3 = arith.constant 0 : index
    %3 = vector.load %arg1[%c0_2, %c1, %c0_3] : memref<8x16x16xf32, #tpu.memory_space<vmem>>, vector<8x12x16xf32>
    %cst_4 = arith.constant 0.236476019 : f32
    %4 = vector.broadcast %cst_4 : f32 to vector<8x12x16xf32>
    %5 = arith.mulf %3, %4 : vector<8x12x16xf32>
    %6 = arith.addf %2, %5 : vector<8x12x16xf32>
    %c0_5 = arith.constant 0 : index
    %c2 = arith.constant 2 : index
    %c0_6 = arith.constant 0 : index
    %7 = vector.load %arg1[%c0_5, %c2, %c0_6] : memref<8x16x16xf32, #tpu.memory_space<vmem>>, vector<8x12x16xf32>
    %cst_7 = arith.constant 0.30364123 : f32
    %8 = vector.broadcast %cst_7 : f32 to vector<8x12x16xf32>
    %9 = arith.mulf %7, %8 : vector<8x12x16xf32>
    %10 = arith.addf %6, %9 : vector<8x12x16xf32>
    %c0_8 = arith.constant 0 : index
    %c3 = arith.constant 3 : index
    %c0_9 = arith.constant 0 : index
    %11 = vector.load %arg1[%c0_8, %c3, %c0_9] : memref<8x16x16xf32, #tpu.memory_space<vmem>>, vector<8x12x16xf32>
    %cst_10 = arith.constant 0.236476019 : f32
    %12 = vector.broadcast %cst_10 : f32 to vector<8x12x16xf32>
    %13 = arith.mulf %11, %12 : vector<8x12x16xf32>
    %14 = arith.addf %10, %13 : vector<8x12x16xf32>
    %c0_11 = arith.constant 0 : index
    %c4 = arith.constant 4 : index
    %c0_12 = arith.constant 0 : index
    %15 = vector.load %arg1[%c0_11, %c4, %c0_12] : memref<8x16x16xf32, #tpu.memory_space<vmem>>, vector<8x12x16xf32>
    %cst_13 = arith.constant 0.111703366 : f32
    %16 = vector.broadcast %cst_13 : f32 to vector<8x12x16xf32>
    %17 = arith.mulf %15, %16 : vector<8x12x16xf32>
    %18 = arith.addf %14, %17 : vector<8x12x16xf32>
    %c0_14 = arith.constant 0 : index
    %c0_15 = arith.constant 0 : index
    %c0_16 = arith.constant 0 : index
    %19 = vector.load %arg3[%c0_14, %c0_15, %c0_16] : memref<8x12x16xf32, #tpu.memory_space<vmem>>, vector<8x12x16xf32>
    tpu.vector_store %arg3[%c0_14, %c0_15, %c0_16], %18 {strides = array<i32>} : memref<8x12x16xf32, #tpu.memory_space<vmem>>, vector<8x12x16xf32>,
    %c0_17 = arith.constant 0 : index
    %c0_18 = arith.constant 0 : index
    %c0_19 = arith.constant 0 : index
    %20 = vector.load %arg3[%c0_17, %c0_18, %c0_19] : memref<8x12x16xf32, #tpu.memory_space<vmem>>, vector<8x12x12xf32>
    %cst_20 = arith.constant 0.111703366 : f32
    %21 = vector.broadcast %cst_20 : f32 to vector<8x12x12xf32>
    %22 = arith.mulf %20, %21 : vector<8x12x12xf32>
    %c0_21 = arith.constant 0 : index
    %c0_22 = arith.constant 0 : index
    %c1_23 = arith.constant 1 : index
    %23 = vector.load %arg3[%c0_21, %c0_22, %c1_23] : memref<8x12x16xf32, #tpu.memory_space<vmem>>, vector<8x12x12xf32>
    %cst_24 = arith.constant 0.236476019 : f32
    %24 = vector.broadcast %cst_24 : f32 to vector<8x12x12xf32>
    %25 = arith.mulf %23, %24 : vector<8x12x12xf32>
    %26 = arith.addf %22, %25 : vector<8x12x12xf32>
    %c0_25 = arith.constant 0 : index
    %c0_26 = arith.constant 0 : index
    %c2_27 = arith.constant 2 : index
    %27 = vector.load %arg3[%c0_25, %c0_26, %c2_27] : memref<8x12x16xf32, #tpu.memory_space<vmem>>, vector<8x12x12xf32>
    %cst_28 = arith.constant 0.30364123 : f32
    %28 = vector.broadcast %cst_28 : f32 to vector<8x12x12xf32>
    %29 = arith.mulf %27, %28 : vector<8x12x12xf32>
    %30 = arith.addf %26, %29 : vector<8x12x12xf32>
    %c0_29 = arith.constant 0 : index
    %c0_30 = arith.constant 0 : index
    %c3_31 = arith.constant 3 : index
    %31 = vector.load %arg3[%c0_29, %c0_30, %c3_31] : memref<8x12x16xf32, #tpu.memory_space<vmem>>, vector<8x12x12xf32>
    %cst_32 = arith.constant 0.236476019 : f32
    %32 = vector.broadcast %cst_32 : f32 to vector<8x12x12xf32>
    %33 = arith.mulf %31, %32 : vector<8x12x12xf32>
    %34 = arith.addf %30, %33 : vector<8x12x12xf32>
    %c0_33 = arith.constant 0 : index
    %c0_34 = arith.constant 0 : index
    %c4_35 = arith.constant 4 : index
    %35 = vector.load %arg3[%c0_33, %c0_34, %c4_35] : memref<8x12x16xf32, #tpu.memory_space<vmem>>, vector<8x12x12xf32>
    %cst_36 = arith.constant 0.111703366 : f32
    %36 = vector.broadcast %cst_36 : f32 to vector<8x12x12xf32>
    %37 = arith.mulf %35, %36 : vector<8x12x12xf32>
    %38 = arith.addf %34, %37 : vector<8x12x12xf32>
    %c0_37 = arith.constant 0 : index
    %c0_38 = arith.constant 0 : index
    %c0_39 = arith.constant 0 : index
    %39 = vector.load %arg2[%c0_37, %c0_38, %c0_39] : memref<8x12x12xf32, #tpu.memory_space<vmem>>, vector<8x12x12xf32>
    tpu.vector_store %arg2[%c0_37, %c0_38, %c0_39], %38 {strides = array<i32>} : memref<8x12x12xf32, #tpu.memory_space<vmem>>, vector<8x12x12xf32>,
    return
  }
  func.func @transform_0(%arg0: i32) -> (i32, i32, i32) {
    %c0_i32 = arith.constant 0 : i32
    %c0_i32_0 = arith.constant 0 : i32
    %c0_i32_1 = arith.constant 0 : i32
    return %arg0, %c0_i32, %c0_i32_0 : i32, i32, i32
  }
  func.func @transform_1(%arg0: i32) -> (i32, i32, i32) {
    %c0_i32 = arith.constant 0 : i32
    %c0_i32_0 = arith.constant 0 : i32
    %c0_i32_1 = arith.constant 0 : i32
    return %arg0, %c0_i32, %c0_i32_0 : i32, i32, i32
  }
}

</mosaic_0001>

<bundles_post_ra>
// kernel: tpu_custom_call.1
= control target key start
LH: loop header
LB: loop body
LE: loop exit
PB: predicated region body
PF: predicated region fallthrough
CT: control target
= control target key end

     0   :  { %6 = vsyncpa [#allocation4], 0  ;;  %s686_s6 = smov [#allocation3]   ;;  %s1036_s0 = inlined_call_operand.hbm [shape: f32[8,16,16], index: 0, kind: input, shape index: {}]   ;;  %s1037_s1 = inlined_call_operand.vmem [shape: f32[8,12,12], index: 1, kind: output, shape index: {}]  }
   0x1   :  { %s12_s7 = sshll.u32 %s686_s6, 4  ;;  %s662_s10 = scalar_lea.hbm %s1036_s0, 2048  ;;  %s13_s7 = int_to_ptr.vmem [resolvable:$true] %s12_s7 }
   0x2   :  { %p663_p0 = scmp.ne.s32.totalorder %s1036_s0, %s662_s10  ;;  %p666_p1 = scmp.lt.u32.totalorder %s662_s10, %s1036_s0 }
   0x4   :  { %p668_p2 = pnand %p666_p1, %p663_p0 }
   0x6   :  { %671 = shalt.err (!%p668_p2)
}
   0x7   :  { %s672_s15 = scalar_lea.vmem %s13_s7, 2048  ;;  %p677_p4 = scmp.lt.s32.totalorder %s13_s7, %s13_s7 }
   0x8   :  { %p673_p3 = scmp.ne.s32.totalorder %s13_s7, %s672_s15  ;;  %p678_p5 = scmp.lt.s32.totalorder %s672_s15, %s672_s15 }
   0xa   :  { %p679_p6 = por %p678_p5, %p677_p4 }
   0xc   :  { %p680_p7 = pnand %p679_p6, %p673_p3 }
   0xe   :  { %683 = shalt.err (!%p680_p7)
}
   0xf   :  { %s687_s16 = smov 128   ;;  %s688_s17 = smov 8  }
  0x10   :  { %18 = dma.hbm_to_vmem [thread:$0]  %s1036_s0, 2048, %s13_s7, [#allocation4], %s687_s16, %s687_s16, %s688_s17  }
  0x11   :  { %684 = dma.done.wait [#allocation4], 2048  }
  0x12   :  { %685 = vsyncadd [#allocation4], 4294965248  ;;  %v24_v0 = vld [vmem:[#allocation3 + $0x10] sm:$0xff]  ;;  %v22_v8 = vld [vmem:[#allocation3] sm:$0xff]  ;;  %vm246_vm0 = vcmask 130048   ;;  %vm248_vm1 = vcmask 125952  }
  0x13   :  { %v56_v1 = vld [vmem:[#allocation3 + $0x11] sm:$0xff]  ;;  %v40_v3 = vmul.f32 0.111703366, %v24_v0  ;;  %v38_v11 = vmul.f32 0.111703366, %v22_v8  ;;  %v54_v13 = vld [vmem:[#allocation3 + $0x1] sm:$0xff] }
  0x14   :  { %v104_v2 = vld [vmem:[#allocation3 + $0x12] sm:$0xff]  ;;  %v72_v4 = vmul.f32 0.23647602, %v56_v1  ;;  %v102_v14 = vld [vmem:[#allocation3 + $0x2] sm:$0xff]  ;;  %v70_v17 = vmul.f32 0.23647602, %v54_v13 }
  0x15   :  { %v120_v5 = vmul.f32 0.30364123, %v104_v2  ;;  %v152_v6 = vld [vmem:[#allocation3 + $0x13] sm:$0xff]  ;;  %v150_v15 = vld [vmem:[#allocation3 + $0x3] sm:$0xff]  ;;  %v118_v18 = vmul.f32 0.30364123, %v102_v14 }
  0x16   :  { %v200_v7 = vld [vmem:[#allocation3 + $0x14] sm:$0xff]  ;;  %v88_v9 = vadd.f32 %v72_v4, %v40_v3  ;;  %v168_v10 = vmul.f32 0.23647602, %v152_v6  ;;  %v166_v19 = vmul.f32 0.23647602, %v150_v15  ;;  %v198_v20 = vld [vmem:[#allocation3 + $0x4] sm:$0xff]  ;;  %v86_v24 = vadd.f32 %v70_v17, %v38_v11 }
  0x17   :  { %v216_v12 = vmul.f32 0.111703366, %v200_v7  ;;  %v25_v21 = vld [vmem:[#allocation3 + $0x18] sm:$0xf]  ;;  %v214_v25 = vmul.f32 0.111703366, %v198_v20 }
  0x18   :  { %v136_v16 = vadd.f32 %v120_v5, %v88_v9  ;;  %v57_v22 = vld [vmem:[#allocation3 + $0x19] sm:$0xf]  ;;  %v41_v26 = vmul.f32 0.111703366, %v25_v21  ;;  %v134_v32 = vadd.f32 %v118_v18, %v86_v24  ;;  %v23_v35 = vld [vmem:[#allocation3 + $0x8] sm:$0xf] }
  0x19   :  { %v105_v27 = vld [vmem:[#allocation3 + $0x1a] sm:$0xf]  ;;  %v73_v28 = vmul.f32 0.23647602, %v57_v22  ;;  %v39_v38 = vmul.f32 0.111703366, %v23_v35 }
  0x1a   :  { %v184_v23 = vadd.f32 %v168_v10, %v136_v16  ;;  %v121_v29 = vmul.f32 0.30364123, %v105_v27  ;;  %v153_v30 = vld [vmem:[#allocation3 + $0x1b] sm:$0xf]  ;;  %v55_v39 = vld [vmem:[#allocation3 + $0x9] sm:$0xf]  ;;  %v182_v40 = vadd.f32 %v166_v19, %v134_v32 }
  0x1b   :  { %v169_v33 = vmul.f32 0.23647602, %v153_v30  ;;  %v201_v34 = vld [vmem:[#allocation3 + $0x1c] sm:$0xf]  ;;  %v89_v36 = vadd.f32 %v73_v28, %v41_v26  ;;  %v71_v41 = vmul.f32 0.23647602, %v55_v39 }
  0x1c   :  { %v232_v31 = vadd.f32 %v216_v12, %v184_v23  ;;  %v217_v37 = vmul.f32 0.111703366, %v201_v34  ;;  %v103_v42 = vld [vmem:[#allocation3 + $0xa] sm:$0xf]  ;;  %v230_v48 = vadd.f32 %v214_v25, %v182_v40  ;;  %v26_v1 = vld [vmem:[#allocation3 + $0x20] sm:$0xff]  ;;  %s689_s0 = smov 127  }
  0x1d   :  { %v151_v43 = vld [vmem:[#allocation3 + $0xb] sm:$0xf]  ;;  %v137_v44 = vadd.f32 %v121_v29, %v89_v36  ;;  %v119_v45 = vmul.f32 0.30364123, %v103_v42  ;;  %v87_v49 = vadd.f32 %v71_v41, %v39_v38  ;;  %v58_v2 = vld [vmem:[#allocation3 + $0x21] sm:$0xff]  ;;  %v28_v29 = vld [vmem:[#allocation3 + $0x30] sm:$0xff] }
  0x1e   :  { %250 = vst.msk [vmem:[#allocation2 + $0x10] sm:$0xff] %vm246_vm0, %v232_v31  ;;  %v167_v46 = vmul.f32 0.23647602, %v151_v43  ;;  %v199_v47 = vld [vmem:[#allocation3 + $0xc] sm:$0xf]  ;;  %247 = vst.msk [vmem:[#allocation2] sm:$0xff] %vm246_vm0, %v230_v48 }
  0x1f   :  { %v215_v50 = vmul.f32 0.111703366, %v199_v47  ;;  %v27_v51 = vld [vmem:[#allocation3 + $0x28] sm:$0xf]  ;;  %v185_v53 = vadd.f32 %v169_v33, %v137_v44  ;;  %v135_v57 = vadd.f32 %v119_v45, %v87_v49  ;;  %v203_v60 = vld [vmem:[#allocation3 + $0x2c] sm:$0xf] }
  0x20   :  { %v59_v52 = vld [vmem:[#allocation3 + $0x29] sm:$0xf]  ;;  %v43_v54 = vmul.f32 0.111703366, %v27_v51  ;;  %v219_v0 = vmul.f32 0.111703366, %v203_v60 }
  0x21   :  { %v75_v55 = vmul.f32 0.23647602, %v59_v52  ;;  %v107_v56 = vld [vmem:[#allocation3 + $0x2a] sm:$0xf]  ;;  %v233_v61 = vadd.f32 %v217_v37, %v185_v53  ;;  %v183_v3 = vadd.f32 %v167_v46, %v135_v57  ;;  %v42_v4 = vmul.f32 0.111703366, %v26_v1 }
  0x22   :  { %v123_v58 = vmul.f32 0.30364123, %v107_v56  ;;  %v155_v59 = vld [vmem:[#allocation3 + $0x2b] sm:$0xf]  ;;  %v74_v5 = vmul.f32 0.23647602, %v58_v2 }
  0x23   :  { %v91_v62 = vadd.f32 %v75_v55, %v43_v54  ;;  %v171_v63 = vmul.f32 0.23647602, %v155_v59  ;;  %v106_v6 = vld [vmem:[#allocation3 + $0x22] sm:$0xff]  ;;  %251 = vst.msk [vmem:[#allocation2 + $0x18] sm:$0xf] %vm248_vm1, %v233_v61  ;;  %v231_v14 = vadd.f32 %v215_v50, %v183_v3  ;;  %v60_v34 = vld [vmem:[#allocation3 + $0x31] sm:$0xff] }
  0x24   :  { %v154_v7 = vld [vmem:[#allocation3 + $0x23] sm:$0xff]  ;;  %v122_v10 = vmul.f32 0.30364123, %v106_v6  ;;  %v90_v15 = vadd.f32 %v74_v5, %v42_v4  ;;  %v29_v17 = vld [vmem:[#allocation3 + $0x38] sm:$0xf]  ;;  %s690_s20 = smov 126  }
  0x25   :  { %v717_v8 = vld [vmem:[#allocation2 + $0x10] sm:$0xff]  ;;  %v139_v9 = vadd.f32 %v123_v58, %v91_v62  ;;  %v170_v11 = vmul.f32 0.23647602, %v154_v7  ;;  %v202_v12 = vld [vmem:[#allocation3 + $0x24] sm:$0xff]  ;;  %v45_v19 = vmul.f32 0.111703366, %v29_v17 }
  0x26   :  { %v721_v13 = vmul.f32 0.23647602, %v717_v8  ;;  %v218_v16 = vmul.f32 0.111703366, %v202_v12  ;;  %v61_v20 = vld [vmem:[#allocation3 + $0x39] sm:$0xf]  ;;  %v138_v22 = vadd.f32 %v122_v10, %v90_v15 }
  0x27   :  { %v187_v18 = vadd.f32 %v171_v63, %v139_v9  ;;  %v109_v21 = vld [vmem:[#allocation3 + $0x3a] sm:$0xf]  ;;  %249 = vst.msk [vmem:[#allocation2 + $0x8] sm:$0xf] %vm248_vm1, %v231_v14  ;;  %v77_v23 = vmul.f32 0.23647602, %v61_v20 }
  0x28   :  { %332 = vrot.lane.b32.xlu1 %v721_v13, %s689_s0  ;;  %v125_v24 = vmul.f32 0.30364123, %v109_v21  ;;  %v157_v25 = vld [vmem:[#allocation3 + $0x3b] sm:$0xf]  ;;  %v726_v26 = vld [vmem:[#allocation2] sm:$0xff]  ;;  %v186_v31 = vadd.f32 %v170_v11, %v138_v22  ;;  %v108_v35 = vld [vmem:[#allocation3 + $0x32] sm:$0xff] }
  0x29   :  { %v235_v27 = vadd.f32 %v219_v0, %v187_v18  ;;  %v205_v28 = vld [vmem:[#allocation3 + $0x3c] sm:$0xf]  ;;  %v729_v30 = vmul.f32 0.23647602, %v726_v26  ;;  %v93_v32 = vadd.f32 %v77_v23, %v45_v19  ;;  %v173_v33 = vmul.f32 0.23647602, %v157_v25 }
  0x2a   :  { %v44_v36 = vmul.f32 0.111703366, %v28_v29  ;;  %v76_v37 = vmul.f32 0.23647602, %v60_v34  ;;  %v124_v38 = vmul.f32 0.30364123, %v108_v35  ;;  %v234_v40 = vadd.f32 %v218_v16, %v186_v31 }
  0x2b   :  { %253 = vst.msk [vmem:[#allocation2 + $0x28] sm:$0xf] %vm248_vm1, %v235_v27  ;;  %328 = vrot.lane.b32.xlu0 %v729_v30, %s689_s0  ;;  %v734_v39 = vld [vmem:[#allocation2 + $0x18] sm:$0xf]  ;;  %v141_v41 = vadd.f32 %v125_v24, %v93_v32  ;;  %v221_v42 = vmul.f32 0.111703366, %v205_v28 }
  0x2c   :  { %v156_v43 = vld [vmem:[#allocation3 + $0x33] sm:$0xff]  ;;  %v737_v45 = vmul.f32 0.23647602, %v734_v39  ;;  %v92_v46 = vadd.f32 %v76_v37, %v44_v36  ;;  %252 = vst.msk [vmem:[#allocation2 + $0x20] sm:$0xff] %vm246_vm0, %v234_v40  ;;  %v31_v50 = vld [vmem:[#allocation3 + $0x48] sm:$0xf] }
  0x2d   :  { %v204_v44 = vld [vmem:[#allocation3 + $0x34] sm:$0xff]  ;;  %v172_v47 = vmul.f32 0.23647602, %v156_v43  ;;  %v189_v49 = vadd.f32 %v173_v33, %v141_v41  ;;  %v63_v51 = vld [vmem:[#allocation3 + $0x49] sm:$0xf]  ;;  %v30_v1 = vld [vmem:[#allocation3 + $0x40] sm:$0xff] }
  0x2e   :  { %v220_v48 = vmul.f32 0.111703366, %v204_v44  ;;  %v111_v52 = vld [vmem:[#allocation3 + $0x4a] sm:$0xf]  ;;  %334 = vrot.lane.b32.xlu1 %v737_v45, %s689_s0  ;;  %v140_v54 = vadd.f32 %v124_v38, %v92_v46  ;;  %v47_v55 = vmul.f32 0.111703366, %v31_v50 }
  0x2f   :  { %v742_v53 = vld [vmem:[#allocation2 + $0x8] sm:$0xf]  ;;  %v79_v56 = vmul.f32 0.23647602, %v63_v51  ;;  %v237_v58 = vadd.f32 %v221_v42, %v189_v49  ;;  %v127_v59 = vmul.f32 0.30364123, %v111_v52 }
  0x30   :  { %v745_v57 = vmul.f32 0.23647602, %v742_v53  ;;  %v159_v60 = vld [vmem:[#allocation3 + $0x4b] sm:$0xf]  ;;  %v188_v61 = vadd.f32 %v172_v47, %v140_v54  ;;  %v62_v2 = vld [vmem:[#allocation3 + $0x41] sm:$0xff]  ;;  %v32_v17 = vld [vmem:[#allocation3 + $0x50] sm:$0xff] }
  0x31   :  { %v95_v62 = vadd.f32 %v79_v56, %v47_v55  ;;  %v175_v63 = vmul.f32 0.23647602, %v159_v60  ;;  %v207_v0 = vld [vmem:[#allocation3 + $0x4c] sm:$0xf]  ;;  %255 = vst.msk [vmem:[#allocation2 + $0x38] sm:$0xf] %vm248_vm1, %v237_v58 }
  0x32   :  { %330 = vrot.lane.b32.xlu0 %v745_v57, %s689_s0  ;;  %v749_v3 = vld [vmem:[#allocation2 + $0x28] sm:$0xf]  ;;  %v223_v4 = vmul.f32 0.111703366, %v207_v0  ;;  %v46_v5 = vmul.f32 0.111703366, %v30_v1  ;;  %v236_v7 = vadd.f32 %v220_v48, %v188_v61 }
  0x33   :  { %v753_v6 = vmul.f32 0.23647602, %v749_v3  ;;  %v143_v9 = vadd.f32 %v127_v59, %v95_v62  ;;  %v78_v10 = vmul.f32 0.23647602, %v62_v2  ;;  %v110_v11 = vld [vmem:[#allocation3 + $0x42] sm:$0xff]  ;;  %v64_v23 = vld [vmem:[#allocation3 + $0x51] sm:$0xff] }
  0x34   :  { %v158_v12 = vld [vmem:[#allocation3 + $0x43] sm:$0xff]  ;;  %v126_v14 = vmul.f32 0.30364123, %v110_v11  ;;  %254 = vst.msk [vmem:[#allocation2 + $0x30] sm:$0xff] %vm246_vm0, %v236_v7  ;;  %v33_v22 = vld [vmem:[#allocation3 + $0x58] sm:$0xf] }
  0x35   :  { %v174_v15 = vmul.f32 0.23647602, %v158_v12  ;;  %v206_v16 = vld [vmem:[#allocation3 + $0x44] sm:$0xff]  ;;  %338 = vrot.lane.b32.xlu1 %v753_v6, %s689_s0  ;;  %v191_v19 = vadd.f32 %v175_v63, %v143_v9  ;;  %v94_v20 = vadd.f32 %v78_v10, %v46_v5  ;;  %v49_v25 = vmul.f32 0.111703366, %v33_v22  ;;  %v112_v46 = vld [vmem:[#allocation3 + $0x52] sm:$0xff] }
  0x36   :  { %v757_v18 = vld [vmem:[#allocation2 + $0x20] sm:$0xff]  ;;  %v222_v21 = vmul.f32 0.111703366, %v206_v16  ;;  %v65_v27 = vld [vmem:[#allocation3 + $0x59] sm:$0xf]  ;;  %s691_s21 = smov 125  }
  0x37   :  { %v761_v24 = vmul.f32 0.23647602, %v757_v18  ;;  %v239_v28 = vadd.f32 %v223_v4, %v191_v19  ;;  %v142_v29 = vadd.f32 %v126_v14, %v94_v20  ;;  %v81_v31 = vmul.f32 0.23647602, %v65_v27  ;;  %v113_v32 = vld [vmem:[#allocation3 + $0x5a] sm:$0xf] }
  0x38   :  { %v161_v33 = vld [vmem:[#allocation3 + $0x5b] sm:$0xf]  ;;  %v129_v34 = vmul.f32 0.30364123, %v113_v32  ;;  %v48_v42 = vmul.f32 0.111703366, %v32_v17 }
  0x39   :  { %336 = vrot.lane.b32.xlu0 %v761_v24, %s689_s0  ;;  %v177_v35 = vmul.f32 0.23647602, %v161_v33  ;;  %v209_v36 = vld [vmem:[#allocation3 + $0x5c] sm:$0xf]  ;;  %v765_v37 = vld [vmem:[#allocation2 + $0x38] sm:$0xf]  ;;  %v190_v38 = vadd.f32 %v174_v15, %v142_v29  ;;  %v97_v40 = vadd.f32 %v81_v31, %v49_v25 }
  0x3a   :  { %257 = vst.msk [vmem:[#allocation2 + $0x48] sm:$0xf] %vm248_vm1, %v239_v28  ;;  %v225_v41 = vmul.f32 0.111703366, %v209_v36  ;;  %v769_v43 = vmul.f32 0.23647602, %v765_v37 }
  0x3b   :  { %v80_v44 = vmul.f32 0.23647602, %v64_v23  ;;  %v160_v47 = vld [vmem:[#allocation3 + $0x53] sm:$0xff]  ;;  %v238_v48 = vadd.f32 %v222_v21, %v190_v38  ;;  %v145_v49 = vadd.f32 %v129_v34, %v97_v40  ;;  %v128_v50 = vmul.f32 0.30364123, %v112_v46  ;;  %v34_v54 = vld [vmem:[#allocation3 + $0x60] sm:$0xff] }
  0x3c   :  { %v176_v51 = vmul.f32 0.23647602, %v160_v47  ;;  %v208_v52 = vld [vmem:[#allocation3 + $0x54] sm:$0xff]  ;;  %342 = vrot.lane.b32.xlu1 %v769_v43, %s689_s0  ;;  %v35_v59 = vld [vmem:[#allocation3 + $0x68] sm:$0xf]  ;;  %s692_s22 = smov 124  }
  0x3d   :  { %v773_v55 = vld [vmem:[#allocation2 + $0x30] sm:$0xff]  ;;  %v96_v56 = vadd.f32 %v80_v44, %v48_v42  ;;  %v224_v58 = vmul.f32 0.111703366, %v208_v52  ;;  %v66_v60 = vld [vmem:[#allocation3 + $0x61] sm:$0xff]  ;;  %256 = vst.msk [vmem:[#allocation2 + $0x40] sm:$0xff] %vm246_vm0, %v238_v48  ;;  %v193_v62 = vadd.f32 %v177_v35, %v145_v49  ;;  %vm634_vm2 = vcmask 93184  }
  0x3e   :  { %v776_v61 = vmul.f32 0.23647602, %v773_v55  ;;  %v51_v63 = vmul.f32 0.111703366, %v35_v59  ;;  %v67_v0 = vld [vmem:[#allocation3 + $0x69] sm:$0xf] }
  0x3f   :  { %v144_v1 = vadd.f32 %v128_v50, %v96_v56  ;;  %v83_v2 = vmul.f32 0.23647602, %v67_v0  ;;  %v115_v4 = vld [vmem:[#allocation3 + $0x6a] sm:$0xf]  ;;  %v241_v7 = vadd.f32 %v225_v41, %v193_v62  ;;  %v50_v17 = vmul.f32 0.111703366, %v34_v54 }
  0x40   :  { %v163_v5 = vld [vmem:[#allocation3 + $0x6b] sm:$0xf]  ;;  %340 = vrot.lane.b32.xlu0 %v776_v61, %s689_s0  ;;  %v131_v9 = vmul.f32 0.30364123, %v115_v4  ;;  %v82_v20 = vmul.f32 0.23647602, %v66_v60 }
  0x41   :  { %v179_v10 = vmul.f32 0.23647602, %v163_v5  ;;  %v211_v11 = vld [vmem:[#allocation3 + $0x6c] sm:$0xf]  ;;  %v781_v12 = vld [vmem:[#allocation2 + $0x48] sm:$0xf]  ;;  %v192_v14 = vadd.f32 %v176_v51, %v144_v1  ;;  %v99_v15 = vadd.f32 %v83_v2, %v51_v63 }
  0x42   :  { %v227_v16 = vmul.f32 0.111703366, %v211_v11  ;;  %v784_v19 = vmul.f32 0.23647602, %v781_v12  ;;  %259 = vst.msk [vmem:[#allocation2 + $0x58] sm:$0xf] %vm248_vm1, %v241_v7  ;;  %v98_v32 = vadd.f32 %v82_v20, %v50_v17 }
  0x43   :  { %v114_v21 = vld [vmem:[#allocation3 + $0x62] sm:$0xff]  ;;  %v240_v23 = vadd.f32 %v224_v58, %v192_v14  ;;  %v147_v25 = vadd.f32 %v131_v9, %v99_v15  ;;  %v36_v31 = vld [vmem:[#allocation3 + $0x70] sm:$0xff]  ;;  %v37_v34 = vld [vmem:[#allocation3 + $0x78] sm:$0xf]  ;;  %vm632_vm3 = vcmask 97280  }
  0x44   :  { %v162_v22 = vld [vmem:[#allocation3 + $0x63] sm:$0xff]  ;;  %v130_v27 = vmul.f32 0.30364123, %v114_v21  ;;  %346 = vrot.lane.b32.xlu1 %v784_v19, %s689_s0  ;;  %v69_v35 = vld [vmem:[#allocation3 + $0x79] sm:$0xf]  ;;  %v68_v42 = vld [vmem:[#allocation3 + $0x71] sm:$0xff] }
  0x45   :  { %v178_v28 = vmul.f32 0.23647602, %v162_v22  ;;  %v210_v29 = vld [vmem:[#allocation3 + $0x64] sm:$0xff]  ;;  %258 = vst.msk [vmem:[#allocation2 + $0x50] sm:$0xff] %vm246_vm0, %v240_v23  ;;  %v195_v38 = vadd.f32 %v179_v10, %v147_v25  ;;  %v53_v40 = vmul.f32 0.111703366, %v37_v34 }
  0x46   :  { %v226_v33 = vmul.f32 0.111703366, %v210_v29  ;;  %v789_v36 = vld [vmem:[#allocation2 + $0x40] sm:$0xff]  ;;  %v85_v41 = vmul.f32 0.23647602, %v69_v35  ;;  %v146_v46 = vadd.f32 %v130_v27, %v98_v32  ;;  %v116_v0 = vld [vmem:[#allocation3 + $0x72] sm:$0xff] }
  0x47   :  { %v793_v44 = vmul.f32 0.23647602, %v789_v36  ;;  %v117_v47 = vld [vmem:[#allocation3 + $0x7a] sm:$0xf]  ;;  %v243_v49 = vadd.f32 %v227_v16, %v195_v38  ;;  %v52_v58 = vmul.f32 0.111703366, %v36_v31 }
  0x48   :  { %v165_v48 = vld [vmem:[#allocation3 + $0x7b] sm:$0xf]  ;;  %v101_v50 = vadd.f32 %v85_v41, %v53_v40  ;;  %v133_v51 = vmul.f32 0.30364123, %v117_v47  ;;  %v194_v56 = vadd.f32 %v178_v28, %v146_v46  ;;  %v84_v59 = vmul.f32 0.23647602, %v68_v42 }
  0x49   :  { %v181_v52 = vmul.f32 0.23647602, %v165_v48  ;;  %v213_v54 = vld [vmem:[#allocation3 + $0x7c] sm:$0xf]  ;;  %344 = vrot.lane.b32.xlu0 %v793_v44, %s689_s0  ;;  %v797_v60 = vld [vmem:[#allocation2 + $0x58] sm:$0xf] }
  0x4a   :  { %261 = vst.msk [vmem:[#allocation2 + $0x68] sm:$0xf] %vm248_vm1, %v243_v49  ;;  %v149_v62 = vadd.f32 %v133_v51, %v101_v50  ;;  %v229_v63 = vmul.f32 0.111703366, %v213_v54  ;;  %v164_v1 = vld [vmem:[#allocation3 + $0x73] sm:$0xff]  ;;  %v242_v4 = vadd.f32 %v226_v33, %v194_v56  ;;  %v100_v5 = vadd.f32 %v84_v59, %v52_v58 }
  0x4b   :  { %v801_v2 = vmul.f32 0.23647602, %v797_v60  ;;  %v132_v7 = vmul.f32 0.30364123, %v116_v0  ;;  %v212_v9 = vld [vmem:[#allocation3 + $0x74] sm:$0xff] }
  0x4c   :  { %v197_v10 = vadd.f32 %v181_v52, %v149_v62  ;;  %v180_v11 = vmul.f32 0.23647602, %v164_v1  ;;  %v805_v14 = vld [vmem:[#allocation2 + $0x50] sm:$0xff]  ;;  %260 = vst.msk [vmem:[#allocation2 + $0x60] sm:$0xff] %vm246_vm0, %v242_v4  ;;  %v228_v16 = vmul.f32 0.111703366, %v212_v9 }
  0x4d   :  { %350 = vrot.lane.b32.xlu1 %v801_v2, %s689_s0  ;;  %v148_v15 = vadd.f32 %v132_v7, %v100_v5  ;;  %v809_v17 = vmul.f32 0.23647602, %v805_v14  ;;  %v393_v33 = vmul.f32 0.30364123, %v742_v53  ;;  %v392_v35 = vmul.f32 0.30364123, %v726_v26 }
  0x4e   :  { %v245_v20 = vadd.f32 %v229_v63, %v197_v10  ;;  %v395_v38 = vmul.f32 0.30364123, %v734_v39  ;;  %v394_v40 = vmul.f32 0.30364123, %v717_v8  ;;  %v397_v41 = vmul.f32 0.30364123, %v749_v3 }
  0x4f   :  { %v196_v21 = vadd.f32 %v180_v11, %v148_v15  ;;  %348 = vrot.lane.b32.xlu0 %v809_v17, %s689_s0  ;;  %v396_v42 = vmul.f32 0.30364123, %v757_v18  ;;  %v399_v46 = vmul.f32 0.30364123, %v765_v37  ;;  %v398_v47 = vmul.f32 0.30364123, %v773_v55 }
  0x50   :  { %263 = vst.msk [vmem:[#allocation2 + $0x78] sm:$0xf] %vm248_vm1, %v245_v20  ;;  %v401_v48 = vmul.f32 0.30364123, %v781_v12  ;;  %v400_v49 = vmul.f32 0.30364123, %v789_v36 }
  0x51   :  { %v814_v22 = vld [vmem:[#allocation2 + $0x68] sm:$0xf]  ;;  %v244_v23 = vadd.f32 %v228_v16, %v196_v21  ;;  %v403_v50 = vmul.f32 0.30364123, %v797_v60  ;;  %v402_v51 = vmul.f32 0.30364123, %v805_v14 }
  0x52   :  { %v309_v25 = vmul.f32 0.23647602, %v814_v22  ;;  %v405_v52 = vmul.f32 0.30364123, %v814_v22  ;;  %v286_v62 = vmul.f32 0.111703366, %v773_v55 }
  0x53   :  { %262 = vst.msk [vmem:[#allocation2 + $0x70] sm:$0xff] %vm246_vm0, %v244_v23  ;;  %v819_v27 = vld [vmem:[#allocation2 + $0x60] sm:$0xff]  ;;  %v290_v55 = vmul.f32 0.111703366, %v805_v14 }
  0x54   :  { %354 = vrot.lane.b32.xlu1 %v309_v25, %s689_s0  ;;  %v308_v28 = vmul.f32 0.23647602, %v819_v27  ;;  %v404_v54 = vmul.f32 0.30364123, %v819_v27 }
  0x56   :  { %352 = vrot.lane.b32.xlu0 %v308_v28, %s689_s0 }
  0x57   :  { %v823_v29 = vld [vmem:[#allocation2 + $0x78] sm:$0xf] }
  0x58   :  { %v311_v31 = vmul.f32 0.23647602, %v823_v29  ;;  %v407_v56 = vmul.f32 0.30364123, %v823_v29 }
  0x5a   :  { %358 = vrot.lane.b32.xlu1 %v311_v31, %s689_s0  ;;  %v827_v32 = vld [vmem:[#allocation2 + $0x70] sm:$0xff] }
  0x5b   :  { %v310_v34 = vmul.f32 0.23647602, %v827_v32  ;;  %v406_v58 = vmul.f32 0.30364123, %v827_v32  ;;  %v294_v14 = vmul.f32 0.111703366, %v827_v32 }
  0x5d   :  { %356 = vrot.lane.b32.xlu0 %v310_v34, %s689_s0 }
  0x5e   :  { %426 = vrot.lane.b32.xlu1 %v393_v33, %s690_s20 }
  0x61   :  { %424 = vrot.lane.b32.xlu0 %v392_v35, %s690_s20 }
  0x62   :  { %430 = vrot.lane.b32.xlu1 %v395_v38, %s690_s20 }
  0x65   :  { %428 = vrot.lane.b32.xlu0 %v394_v40, %s690_s20 }
  0x66   :  { %434 = vrot.lane.b32.xlu1 %v397_v41, %s690_s20 }
  0x69   :  { %432 = vrot.lane.b32.xlu0 %v396_v42, %s690_s20 }
  0x6a   :  { %438 = vrot.lane.b32.xlu1 %v399_v46, %s690_s20 }
  0x6d   :  { %436 = vrot.lane.b32.xlu0 %v398_v47, %s690_s20 }
  0x6e   :  { %442 = vrot.lane.b32.xlu1 %v401_v48, %s690_s20 }
  0x71   :  { %440 = vrot.lane.b32.xlu0 %v400_v49, %s690_s20 }
  0x72   :  { %446 = vrot.lane.b32.xlu1 %v403_v50, %s690_s20 }
  0x75   :  { %444 = vrot.lane.b32.xlu0 %v402_v51, %s690_s20 }
  0x76   :  { %450 = vrot.lane.b32.xlu1 %v405_v52, %s690_s20 }
  0x79   :  { %448 = vrot.lane.b32.xlu0 %v404_v54, %s690_s20 }
  0x7a   :  { %454 = vrot.lane.b32.xlu1 %v407_v56, %s690_s20 }
  0x7d   :  { %452 = vrot.lane.b32.xlu0 %v406_v58, %s690_s20 }
  0x7e   :  { %490 = vrot.lane.b32.xlu1 %v745_v57, %s691_s21  ;;  %v280_v57 = vmul.f32 0.111703366, %v726_v26  ;;  %v284_v26 = vmul.f32 0.111703366, %v757_v18  ;;  %v288_v18 = vmul.f32 0.111703366, %v789_v36 }
  0x7f   :  { %v292_v36 = vmul.f32 0.111703366, %v819_v27 }
  0x81   :  { %488 = vrot.lane.b32.xlu0 %v729_v30, %s691_s21  ;;  %v282_v30 = vmul.f32 0.111703366, %v717_v8  ;;  %v285_v8 = vmul.f32 0.111703366, %v749_v3  ;;  %v289_v3 = vmul.f32 0.111703366, %v781_v12 }
  0x82   :  { %494 = vrot.lane.b32.xlu1 %v737_v45, %s691_s21  ;;  %v293_v12 = vmul.f32 0.111703366, %v814_v22 }
  0x85   :  { %492 = vrot.lane.b32.xlu0 %v721_v13, %s691_s21  ;;  %v281_v13 = vmul.f32 0.111703366, %v742_v53 }
  0x86   :  { %498 = vrot.lane.b32.xlu1 %v753_v6, %s691_s21 }
  0x89   :  { %496 = vrot.lane.b32.xlu0 %v761_v24, %s691_s21  ;;  %v283_v24 = vmul.f32 0.111703366, %v734_v39  ;;  %v287_v39 = vmul.f32 0.111703366, %v765_v37 }
  0x8a   :  { %502 = vrot.lane.b32.xlu1 %v769_v43, %s691_s21 }
  0x8d   :  { %500 = vrot.lane.b32.xlu0 %v776_v61, %s691_s21 }
  0x8e   :  { %506 = vrot.lane.b32.xlu1 %v784_v19, %s691_s21 }
  0x91   :  { %504 = vrot.lane.b32.xlu0 %v793_v44, %s691_s21 }
  0x92   :  { %510 = vrot.lane.b32.xlu1 %v801_v2, %s691_s21  ;;  %v291_v2 = vmul.f32 0.111703366, %v797_v60  ;;  %v295_v60 = vmul.f32 0.111703366, %v823_v29 }
  0x95   :  { %508 = vrot.lane.b32.xlu0 %v809_v17, %s691_s21 }
  0x96   :  { %514 = vrot.lane.b32.xlu1 %v309_v25, %s691_s21 }
  0x99   :  { %512 = vrot.lane.b32.xlu0 %v308_v28, %s691_s21 }
  0x9a   :  { %518 = vrot.lane.b32.xlu1 %v311_v31, %s691_s21  ;;  %v333_v45 = vpop.permute.xlu1 %332 }
  0x9b   :  { %v862_v6 = vadd.f32 %v333_v45, %v282_v30 }
  0x9d   :  { %516 = vrot.lane.b32.xlu0 %v310_v34, %s691_s21  ;;  %v329_v43 = vpop.permute.xlu0 %328 }
  0x9e   :  { %570 = vrot.lane.b32.xlu1 %v281_v13, %s692_s22  ;;  %v867_v61 = vadd.f32 %v329_v43, %v280_v57 }
  0xa0   :  { %v335_v53 = vpop.permute.xlu1 %334 }
  0xa1   :  { %568 = vrot.lane.b32.xlu0 %v280_v57, %s692_s22  ;;  %v871_v19 = vadd.f32 %v335_v53, %v283_v24 }
  0xa2   :  { %574 = vrot.lane.b32.xlu1 %v283_v24, %s692_s22 }
  0xa4   :  { %v331_v44 = vpop.permute.xlu0 %330 }
  0xa5   :  { %572 = vrot.lane.b32.xlu0 %v282_v30, %s692_s22  ;;  %v877_v59 = vadd.f32 %v331_v44, %v281_v13 }
  0xa6   :  { %578 = vrot.lane.b32.xlu1 %v285_v8, %s692_s22 }
  0xa7   :  { %v339_v63 = vpop.permute.xlu1 %338 }
  0xa8   :  { %v883_v0 = vadd.f32 %v339_v63, %v285_v8 }
  0xa9   :  { %576 = vrot.lane.b32.xlu0 %v284_v26, %s692_s22 }
  0xaa   :  { %582 = vrot.lane.b32.xlu1 %v287_v39, %s692_s22 }
  0xab   :  { %v337_v1 = vpop.permute.xlu0 %336 }
  0xac   :  { %v887_v37 = vadd.f32 %v337_v1, %v284_v26 }
  0xad   :  { %580 = vrot.lane.b32.xlu0 %v286_v62, %s692_s22 }
  0xae   :  { %586 = vrot.lane.b32.xlu1 %v289_v3, %s692_s22  ;;  %v343_v4 = vpop.permute.xlu1 %342 }
  0xaf   :  { %v893_v5 = vadd.f32 %v343_v4, %v287_v39 }
  0xb1   :  { %584 = vrot.lane.b32.xlu0 %v288_v18, %s692_s22 }
  0xb2   :  { %590 = vrot.lane.b32.xlu1 %v291_v2, %s692_s22  ;;  %v341_v7 = vpop.permute.xlu0 %340 }
  0xb3   :  { %v897_v9 = vadd.f32 %v341_v7, %v286_v62 }
  0xb5   :  { %588 = vrot.lane.b32.xlu0 %v290_v55, %s692_s22 }
  0xb6   :  { %594 = vrot.lane.b32.xlu1 %v293_v12, %s692_s22  ;;  %v347_v10 = vpop.permute.xlu1 %346 }
  0xb7   :  { %v903_v11 = vadd.f32 %v347_v10, %v289_v3 }
  0xb9   :  { %592 = vrot.lane.b32.xlu0 %v292_v36, %s692_s22 }
  0xba   :  { %598 = vrot.lane.b32.xlu1 %v295_v60, %s692_s22 }
  0xbb   :  { %v345_v15 = vpop.permute.xlu0 %344 }
  0xbc   :  { %v908_v16 = vadd.f32 %v345_v15, %v288_v18 }
  0xbd   :  { %596 = vrot.lane.b32.xlu0 %v294_v14, %s692_s22 }
  0xbf   :  { %v351_v17 = vpop.permute.xlu1 %350 }
  0xc0   :  { %v911_v20 = vadd.f32 %v351_v17, %v291_v2 }
  0xc1   :  { %v349_v21 = vpop.permute.xlu0 %348 }
  0xc2   :  { %v913_v22 = vadd.f32 %v349_v21, %v290_v55 }
  0xc6   :  { %v355_v23 = vpop.permute.xlu1 %354 }
  0xc7   :  { %v915_v25 = vadd.f32 %v355_v23, %v293_v12 }
  0xc8   :  { %v353_v27 = vpop.permute.xlu0 %352 }
  0xc9   :  { %v917_v28 = vadd.f32 %v353_v27, %v292_v36 }
  0xcc   :  { %v359_v29 = vpop.permute.xlu1 %358 }
  0xcd   :  { %v919_v31 = vadd.f32 %v359_v29, %v295_v60 }
  0xcf   :  { %v357_v32 = vpop.permute.xlu0 %356 }
  0xd0   :  { %v921_v33 = vadd.f32 %v357_v32, %v294_v14  ;;  %v427_v34 = vpop.permute.xlu1 %426 }
  0xd1   :  { %v473_v18 = vadd.f32 %v427_v34, %v877_v59 }
  0xd3   :  { %v425_v35 = vpop.permute.xlu0 %424 }
  0xd4   :  { %v431_v38 = vpop.permute.xlu1 %430  ;;  %v472_v55 = vadd.f32 %v425_v35, %v867_v61 }
  0xd5   :  { %v475_v7 = vadd.f32 %v431_v38, %v871_v19 }
  0xd7   :  { %v429_v40 = vpop.permute.xlu0 %428 }
  0xd8   :  { %v435_v41 = vpop.permute.xlu1 %434  ;;  %v474_v59 = vadd.f32 %v429_v40, %v862_v6 }
  0xd9   :  { %v477_v61 = vadd.f32 %v435_v41, %v883_v0 }
  0xdb   :  { %v433_v42 = vpop.permute.xlu0 %432 }
  0xdc   :  { %v439_v46 = vpop.permute.xlu1 %438  ;;  %v476_v6 = vadd.f32 %v433_v42, %v887_v37 }
  0xdd   :  { %v479_v0 = vadd.f32 %v439_v46, %v893_v5 }
  0xdf   :  { %v437_v47 = vpop.permute.xlu0 %436 }
  0xe0   :  { %v443_v48 = vpop.permute.xlu1 %442  ;;  %v478_v37 = vadd.f32 %v437_v47, %v897_v9 }
  0xe1   :  { %v481_v5 = vadd.f32 %v443_v48, %v903_v11 }
  0xe3   :  { %v923_v49 = vpop.permute.xlu0 %440 }
  0xe4   :  { %v925_v50 = vpop.permute.xlu1 %446  ;;  %v480_v9 = vadd.f32 %v923_v49, %v908_v16 }
  0xe5   :  { %v483_v11 = vadd.f32 %v925_v50, %v911_v20 }
  0xe7   :  { %v927_v51 = vpop.permute.xlu0 %444 }
  0xe8   :  { %v929_v52 = vpop.permute.xlu1 %450  ;;  %v482_v16 = vadd.f32 %v927_v51, %v913_v22 }
  0xe9   :  { %v485_v20 = vadd.f32 %v929_v52, %v915_v25 }
  0xeb   :  { %v931_v54 = vpop.permute.xlu0 %448 }
  0xec   :  { %v933_v56 = vpop.permute.xlu1 %454  ;;  %v484_v51 = vadd.f32 %v931_v54, %v917_v28 }
  0xed   :  { %v487_v52 = vadd.f32 %v933_v56, %v919_v31 }
  0xef   :  { %v935_v58 = vpop.permute.xlu0 %452 }
  0xf0   :  { %v491_v13 = vpop.permute.xlu1 %490  ;;  %v486_v54 = vadd.f32 %v935_v58, %v921_v33 }
  0xf1   :  { %v537_v2 = vadd.f32 %v491_v13, %v473_v18 }
  0xf3   :  { %v489_v30 = vpop.permute.xlu0 %488 }
  0xf4   :  { %v495_v45 = vpop.permute.xlu1 %494  ;;  %v536_v60 = vadd.f32 %v489_v30, %v472_v55 }
  0xf5   :  { %v539_v10 = vadd.f32 %v495_v45, %v475_v7 }
  0xf7   :  { %v493_v57 = vpop.permute.xlu0 %492 }
  0xf8   :  { %v499_v24 = vpop.permute.xlu1 %498  ;;  %v538_v23 = vadd.f32 %v493_v57, %v474_v59 }
  0xf9   :  { %v541_v19 = vadd.f32 %v499_v24, %v477_v61 }
  0xfb   :  { %v497_v43 = vpop.permute.xlu0 %496 }
  0xfc   :  { %v503_v8 = vpop.permute.xlu1 %502  ;;  %v540_v35 = vadd.f32 %v497_v43, %v476_v6 }
  0xfd   :  { %v543_v38 = vadd.f32 %v503_v8, %v479_v0 }
  0xff   :  { %v501_v53 = vpop.permute.xlu0 %500 }
 0x100   :  { %v507_v26 = vpop.permute.xlu1 %506  ;;  %v542_v13 = vadd.f32 %v501_v53, %v478_v37 }
 0x101   :  { %v545_v30 = vadd.f32 %v507_v26, %v481_v5 }
 0x103   :  { %v505_v39 = vpop.permute.xlu0 %504 }
 0x104   :  { %v511_v44 = vpop.permute.xlu1 %510  ;;  %v544_v24 = vadd.f32 %v505_v39, %v480_v9 }
 0x105   :  { %v547_v43 = vadd.f32 %v511_v44, %v483_v11 }
 0x107   :  { %v509_v62 = vpop.permute.xlu0 %508 }
 0x108   :  { %v937_v63 = vpop.permute.xlu1 %514  ;;  %v546_v26 = vadd.f32 %v509_v62, %v482_v16 }
 0x109   :  { %v549_v39 = vadd.f32 %v937_v63, %v485_v20 }
 0x10b   :  { %v939_v3 = vpop.permute.xlu0 %512 }
 0x10c   :  { %v941_v1 = vpop.permute.xlu1 %518  ;;  %v548_v18 = vadd.f32 %v939_v3, %v484_v51 }
 0x10d   :  { %v551_v63 = vadd.f32 %v941_v1, %v487_v52 }
 0x10f   :  { %v944_v4 = vpop.permute.xlu0 %516 }
 0x110   :  { %v571_v12 = vpop.permute.xlu1 %570  ;;  %v550_v3 = vadd.f32 %v944_v4, %v486_v54 }
 0x111   :  { %v617_v36 = vadd.f32 %v571_v12, %v537_v2 }
 0x113   :  { %635 = vst.msk [vmem:[%s1037_s1 + $0x8] sm:$0xf] %vm634_vm2, %v617_v36  ;;  %v569_v14 = vpop.permute.xlu0 %568 }
 0x114   :  { %v616_v15 = vadd.f32 %v569_v14, %v536_v60  ;;  %v575_v17 = vpop.permute.xlu1 %574 }
 0x115   :  { %v619_v21 = vadd.f32 %v575_v17, %v539_v10 }
 0x116   :  { %633 = vst.msk [vmem:[%s1037_s1] sm:$0xff] %vm632_vm3, %v616_v15 }
 0x117   :  { %637 = vst.msk [vmem:[%s1037_s1 + $0x18] sm:$0xf] %vm634_vm2, %v619_v21  ;;  %v573_v27 = vpop.permute.xlu0 %572 }
 0x118   :  { %v618_v29 = vadd.f32 %v573_v27, %v538_v23  ;;  %v579_v32 = vpop.permute.xlu1 %578 }
 0x119   :  { %v621_v34 = vadd.f32 %v579_v32, %v541_v19 }
 0x11a   :  { %636 = vst.msk [vmem:[%s1037_s1 + $0x10] sm:$0xff] %vm632_vm3, %v618_v29 }
 0x11b   :  { %639 = vst.msk [vmem:[%s1037_s1 + $0x28] sm:$0xf] %vm634_vm2, %v621_v34  ;;  %v577_v40 = vpop.permute.xlu0 %576 }
 0x11c   :  { %v620_v41 = vadd.f32 %v577_v40, %v540_v35  ;;  %v583_v42 = vpop.permute.xlu1 %582 }
 0x11d   :  { %v623_v46 = vadd.f32 %v583_v42, %v543_v38 }
 0x11e   :  { %638 = vst.msk [vmem:[%s1037_s1 + $0x20] sm:$0xff] %vm632_vm3, %v620_v41 }
 0x11f   :  { %641 = vst.msk [vmem:[%s1037_s1 + $0x38] sm:$0xf] %vm634_vm2, %v623_v46  ;;  %v581_v45 = vpop.permute.xlu0 %580 }
 0x120   :  { %v622_v47 = vadd.f32 %v581_v45, %v542_v13  ;;  %v587_v57 = vpop.permute.xlu1 %586 }
 0x121   :  { %v625_v48 = vadd.f32 %v587_v57, %v545_v30 }
 0x122   :  { %640 = vst.msk [vmem:[%s1037_s1 + $0x30] sm:$0xff] %vm632_vm3, %v622_v47 }
 0x123   :  { %643 = vst.msk [vmem:[%s1037_s1 + $0x48] sm:$0xf] %vm634_vm2, %v625_v48  ;;  %v585_v8 = vpop.permute.xlu0 %584 }
 0x124   :  { %v624_v49 = vadd.f32 %v585_v8, %v544_v24  ;;  %v591_v53 = vpop.permute.xlu1 %590 }
 0x125   :  { %v627_v50 = vadd.f32 %v591_v53, %v547_v43 }
 0x126   :  { %642 = vst.msk [vmem:[%s1037_s1 + $0x40] sm:$0xff] %vm632_vm3, %v624_v49 }
 0x127   :  { %645 = vst.msk [vmem:[%s1037_s1 + $0x58] sm:$0xf] %vm634_vm2, %v627_v50  ;;  %v589_v22 = vpop.permute.xlu0 %588 }
 0x128   :  { %v626_v44 = vadd.f32 %v589_v22, %v546_v26  ;;  %v595_v25 = vpop.permute.xlu1 %594 }
 0x129   :  { %v629_v62 = vadd.f32 %v595_v25, %v549_v39 }
 0x12a   :  { %644 = vst.msk [vmem:[%s1037_s1 + $0x50] sm:$0xff] %vm632_vm3, %v626_v44 }
 0x12b   :  { %647 = vst.msk [vmem:[%s1037_s1 + $0x68] sm:$0xf] %vm634_vm2, %v629_v62  ;;  %v593_v28 = vpop.permute.xlu0 %592 }
 0x12c   :  { %v628_v31 = vadd.f32 %v593_v28, %v548_v18  ;;  %v599_v56 = vpop.permute.xlu1 %598 }
 0x12d   :  { %v631_v2 = vadd.f32 %v599_v56, %v551_v63 }
 0x12e   :  { %646 = vst.msk [vmem:[%s1037_s1 + $0x60] sm:$0xff] %vm632_vm3, %v628_v31 }
 0x12f   :  { %649 = vst.msk [vmem:[%s1037_s1 + $0x78] sm:$0xf] %vm634_vm2, %v631_v2  ;;  %v597_v1 = vpop.permute.xlu0 %596 }
 0x130   :  { %v630_v55 = vadd.f32 %v597_v1, %v550_v3 }
 0x132   :  { %648 = vst.msk [vmem:[%s1037_s1 + $0x70] sm:$0xff] %vm632_vm3, %v630_v55 }
 0x133   :  { %654 = vsyncpa [#allocation4], 1 }

</bundles_post_ra>
